<compile_context>
chip_gen: v5e
topology: v5e:2x2
jax: 0.10.0
libtpu: 0.0.40
codegen_flags: <defaults>
</compile_context>

<pallas_src>
import functools

import jax
import jax.numpy as jnp
from jax.experimental import pallas as pl
from jax.experimental.pallas import tpu as pltpu

LANE = 128  # lane-padded width of the tiny d_out output layer


# ----------------------------------------------------------------------------
# Pallas kernel
# ----------------------------------------------------------------------------
def squad_classifier_kernel(
    q_ref,        # [Tt, Bt*E] f32  (lane-dense flattened encoder output, -inf pad)
    a1_ref,       # [Tt, Bt*E] f32
    a2_ref,       # [Tt, Bt*E] f32
    wb_ref,       # [E, Db]    bf16 bottle weight
    bb_ref,       # [1, Db]    f32  bottle bias
    w1_ref,       # [7*Db, H1] bf16 first classifier layer
    b1_ref,       # [1, H1]    f32
    w2p_ref,      # [H1, 128]  bf16 output layer, lane-padded (pad cols = 0)
    b2p_ref,      # [1, 128]   f32  output bias, pad cols = -1e30 (finite)
    out_ref,      # [Bt, 128]  f32  lane-padded log-softmax (accumulator block)
    qp_ref,       # scratch [1, Bt*E] f32  running time-max of q
    a1p_ref,      # scratch [1, Bt*E] f32
    a2p_ref,      # scratch [1, Bt*E] f32
    pooled2_ref,  # scratch [3*Bt, E] f32  matmul-layout pooled activations
    feat_ref,     # scratch [Bt, 7*Db] f32 assembled classifier features
):
    t = pl.program_id(1)
    n_t = pl.num_programs(1)

    Bt = out_ref.shape[0]
    E, Db = wb_ref.shape

    # --- streaming, lane-dense time-axis max (f32 on the VPU) ---------------
    @pl.when(t == 0)
    def _init():
        neg_inf = jnp.full(qp_ref.shape, -jnp.inf, jnp.float32)
        qp_ref[...] = neg_inf
        a1p_ref[...] = neg_inf
        a2p_ref[...] = neg_inf

    qp_ref[...] = jnp.maximum(qp_ref[...], jnp.max(q_ref[...], axis=0, keepdims=True))
    a1p_ref[...] = jnp.maximum(a1p_ref[...], jnp.max(a1_ref[...], axis=0, keepdims=True))
    a2p_ref[...] = jnp.maximum(a2p_ref[...], jnp.max(a2_ref[...], axis=0, keepdims=True))

    # --- MLP tail only once per batch tile, on the last T step --------------
    @pl.when(t == n_t - 1)
    def _tail():
        # Relayout the tiny pooled rows [1, Bt*E] -> [3*Bt, E] via static
        # slice copies (avoids an unsupported lane->sublane value reshape).
        src_refs = (qp_ref, a1p_ref, a2p_ref)
        for r in range(3):
            for b in range(Bt):
                pooled2_ref[r * Bt + b:r * Bt + b + 1, :] = (
                    src_refs[r][:, b * E:(b + 1) * E])

        # Fused bottle(): ONE MXU matmul for q/a1/a2 (bf16 in, f32 acc).
        bott = (
            jnp.dot(pooled2_ref[...].astype(jnp.bfloat16), wb_ref[...],
                    preferred_element_type=jnp.float32)
            + bb_ref[...]
        )                                                    # [3*Bt, Db] f32
        q_b = bott[0 * Bt:1 * Bt, :]
        a1_b = bott[1 * Bt:2 * Bt, :]
        a2_b = bott[2 * Bt:3 * Bt, :]

        # Assemble the 7 feature blocks at static lane offsets (same order as
        # the torch concat) -> single K = 7*Db matmul below.
        feat_ref[:, 0 * Db:1 * Db] = q_b
        feat_ref[:, 1 * Db:2 * Db] = a1_b
        feat_ref[:, 2 * Db:3 * Db] = a2_b
        feat_ref[:, 3 * Db:4 * Db] = jnp.abs(q_b - a1_b)
        feat_ref[:, 4 * Db:5 * Db] = q_b * a1_b
        feat_ref[:, 5 * Db:6 * Db] = jnp.abs(q_b - a2_b)
        feat_ref[:, 6 * Db:7 * Db] = q_b * a2_b

        # First classifier layer: one K=112 MXU matmul (was 7 K=16 matmuls).
        h = (
            jnp.dot(feat_ref[...].astype(jnp.bfloat16), w1_ref[...],
                    preferred_element_type=jnp.float32)
            + b1_ref[...]
        )
        h = jnp.maximum(h, 0.0)      # ReLU (dropout is identity in eval mode)

        # Lane-padded output layer -> dense [Bt, 128] store.
        scores = (
            jnp.dot(h.astype(jnp.bfloat16), w2p_ref[...],
                    preferred_element_type=jnp.float32)
            + b2p_ref[...]
        )                                                    # [Bt, 128] f32

        # log_softmax along lanes; padded lanes contribute exp(-1e30) == 0.
        m = jnp.max(scores, axis=1, keepdims=True)
        shifted = scores - m
        lse = jnp.log(jnp.sum(jnp.exp(shifted), axis=1, keepdims=True))
        out_ref[...] = shifted - lse


# ----------------------------------------------------------------------------
# One-time parameter preparation (hoisted out of the per-call path)
# ----------------------------------------------------------------------------
def prepare_params(params):
    H1 = params["w1"].shape[1]
    d_out = params["w2"].shape[1]
    w2p = jnp.zeros((H1, LANE), jnp.bfloat16).at[:, :d_out].set(
        params["w2"].astype(jnp.bfloat16))
    b2p = jnp.full((1, LANE), jnp.float32(-1e30), jnp.float32).at[:, :d_out].set(
        params["b2"])
    return {
        "wb": params["wb"].astype(jnp.bfloat16),
        "bb": params["bb"],
        "w1": params["w1"].astype(jnp.bfloat16),
        "b1": params["b1"],
        "w2p": w2p,
        "b2p": b2p,
        "d_out": d_out,
    }


# ----------------------------------------------------------------------------
# Wrapper: layout plumbing (free reshape) + pallas_call with a (B, T) grid
# ----------------------------------------------------------------------------
def squad_classifier_forward(a1, a2, q, prepped, *, block_b=8, block_t=8):
    """a1/a2/q: [T, B, E] padded encoder outputs (pad value -inf), f32.

    block_b / block_t are tunable: at realistic sizes use 512-1024-row T tiles
    on v6e (128 MiB VMEM) and size tiles for 64 MiB VMEM / 2x double-buffering
    on v7x; block_b must stay a multiple of 8 and block_b*E a multiple of 128.
    """
    T, B, E = q.shape
    Db = prepped["wb"].shape[1]
    assert T % block_t == 0 and B % block_b == 0
    assert block_b % 8 == 0 and (block_b * E) % 128 == 0

    # Free row-major reshape: lane-dense [T, B*E] view for the time-max.
    q2 = q.reshape(T, B * E)
    a12 = a1.reshape(T, B * E)
    a22 = a2.reshape(T, B * E)

    n_b, n_t = B // block_b, T // block_t
    seq_spec = pl.BlockSpec((block_t, block_b * E), lambda b, t: (t, b))

    def full_spec(arr):
        return pl.BlockSpec(arr.shape, lambda b, t: (0, 0))

    out_padded = pl.pallas_call(
        squad_classifier_kernel,
        out_shape=jax.ShapeDtypeStruct((B, LANE), jnp.float32),
        grid=(n_b, n_t),
        in_specs=[
            seq_spec, seq_spec, seq_spec,
            full_spec(prepped["wb"]), full_spec(prepped["bb"]),
            full_spec(prepped["w1"]), full_spec(prepped["b1"]),
            full_spec(prepped["w2p"]), full_spec(prepped["b2p"]),
        ],
        out_specs=pl.BlockSpec((block_b, LANE), lambda b, t: (b, 0)),
        scratch_shapes=[
            pltpu.VMEM((1, block_b * E), jnp.float32),   # q running max
            pltpu.VMEM((1, block_b * E), jnp.float32),   # a1 running max
            pltpu.VMEM((1, block_b * E), jnp.float32),   # a2 running max
            pltpu.VMEM((3 * block_b, E), jnp.float32),   # pooled, matmul layout
            pltpu.VMEM((block_b, 7 * Db), jnp.float32),  # assembled features
        ],
        compiler_params=pltpu.CompilerParams(
            dimension_semantics=("parallel", "arbitrary"),
            vmem_limit_bytes=32 * 1024 * 1024,
        ),
    )(q2, a12, a22, prepped["wb"], prepped["bb"], prepped["w1"],
      prepped["b1"], prepped["w2p"], prepped["b2p"])

    return out_padded[:, :prepped["d_out"]]


# ----------------------------------------------------------------------------
# Pure-JAX reference with matching bf16-operand / f32-accumulate precision
# ----------------------------------------------------------------------------
def reference_forward(a1, a2, q, params):
    def bottle(x):
        return (
            jnp.dot(x.astype(jnp.bfloat16), params["wb"].astype(jnp.bfloat16),
                    preferred_element_type=jnp.float32)
            + params["bb"]
        )

    q_b = bottle(jnp.max(q, axis=0))
    a1_b = bottle(jnp.max(a1, axis=0))
    a2_b = bottle(jnp.max(a2, axis=0))
    feats = jnp.concatenate(
        [q_b, a1_b, a2_b, jnp.abs(q_b - a1_b), q_b * a1_b,
         jnp.abs(q_b - a2_b), q_b * a2_b], axis=1)
    h = (
        jnp.dot(feats.astype(jnp.bfloat16), params["w1"].astype(jnp.bfloat16),
                preferred_element_type=jnp.float32)
        + params["b1"]
    )
    h = jnp.maximum(h, 0.0)
    scores = (
        jnp.dot(h.astype(jnp.bfloat16), params["w2"].astype(jnp.bfloat16),
                preferred_element_type=jnp.float32)
        + params["b2"]
    )
    return jax.nn.log_softmax(scores, axis=1)


# ----------------------------------------------------------------------------
# Deterministic parameter construction (torch-default-like uniform init)
# ----------------------------------------------------------------------------
def init_linear(key, d_in, d_out):
    kw, kb = jax.random.split(key)
    bound = 1.0 / jnp.sqrt(d_in)
    w = jax.random.uniform(kw, (d_in, d_out), jnp.float32, -bound, bound)
    b = jax.random.uniform(kb, (1, d_out), jnp.float32, -bound, bound)
    return w, b


if __name__ == "__main__":
    # Small config consistent with the module:
    #   hidden_size=16, bidirectional=True -> embed_size=32
    #   bottle_dim=16 -> seq_in_size = 7*16 = 112
    #   mlp_classif_hidden_size_list=[64], d_out=4
    T, B = 16, 16
    hidden_size, bidirectional = 16, True
    embed_size = hidden_size * (2 if bidirectional else 1)   # 32
    bottle_dim = 16
    mlp_hidden = 64
    d_out = 4

    root = jax.random.PRNGKey(0)
    k_a1, k_a2, k_q, k_len, k_perm, k_wb, k_w1, k_w2 = jax.random.split(root, 8)

    # Synthesized (already-encoded) padded RNN outputs, seq-first [T, B, E].
    def make_encoded(k, klen):
        x = jax.random.normal(k, (T, B, embed_size), jnp.float32)
        lengths = jax.random.randint(klen, (B,), 1, T + 1)          # >= 1 valid step
        t_idx = jnp.arange(T)[:, None, None]                        # [T,1,1]
        mask = t_idx < lengths[None, :, None]                       # [T,B,1]
        return jnp.where(mask, x, -jnp.inf)                         # pad_value = -inf

    kl1, kl2, kl3 = jax.random.split(k_len, 3)
    a1_pad = make_encoded(k_a1, kl1)
    a2_pad = make_encoded(k_a2, kl2)
    q_pad = make_encoded(k_q, kl3)

    # index_select(1, idx_unsort): undo the length-sort permutation (plain JAX glue).
    kp1, kp2, kp3 = jax.random.split(k_perm, 3)
    a1 = jnp.take(a1_pad, jax.random.permutation(kp1, B), axis=1)
    a2 = jnp.take(a2_pad, jax.random.permutation(kp2, B), axis=1)
    q = jnp.take(q_pad, jax.random.permutation(kp3, B), axis=1)

    # Parameters (prepared once, reused across calls).
    wb, bb = init_linear(k_wb, embed_size, bottle_dim)
    w1, b1 = init_linear(k_w1, 7 * bottle_dim, mlp_hidden)
    w2, b2 = init_linear(k_w2, mlp_hidden, d_out)
    params = {"wb": wb, "bb": bb, "w1": w1, "b1": b1, "w2": w2, "b2": b2}
    prepped = jax.tree_util.tree_map(
        lambda x: x, prepare_params(params))  # one-time prep, kept resident

    out = squad_classifier_forward(a1, a2, q, prepped, block_b=8, block_t=8)
    out = jax.block_until_ready(out)
    ref = jax.block_until_ready(reference_forward(a1, a2, q, params))

    # Sanity: shape, log-softmax rows sum to 1 in prob space, matches reference.
    assert out.shape == (B, d_out)
    assert bool(jnp.allclose(jnp.sum(jnp.exp(out), axis=1), 1.0, atol=1e-5))
    assert bool(jnp.allclose(out, ref, atol=1e-3, rtol=1e-3))

    print("KERNEL_OK")
</pallas_src>

<mosaic_0001>
module attributes {stable_mosaic.version = 11 : i64} {
  func.func @squad_classifier_kernel(%arg0: i32, %arg1: i32, %arg2: memref<8x256xf32, #tpu.memory_space<vmem>>, %arg3: memref<8x256xf32, #tpu.memory_space<vmem>>, %arg4: memref<8x256xf32, #tpu.memory_space<vmem>>, %arg5: memref<32x16xbf16, #tpu.memory_space<vmem>>, %arg6: memref<1x16xf32, #tpu.memory_space<vmem>>, %arg7: memref<112x64xbf16, #tpu.memory_space<vmem>>, %arg8: memref<1x64xf32, #tpu.memory_space<vmem>>, %arg9: memref<64x128xbf16, #tpu.memory_space<vmem>>, %arg10: memref<1x128xf32, #tpu.memory_space<vmem>>, %arg11: memref<8x128xf32, #tpu.memory_space<vmem>>, %arg12: memref<1x256xf32, #tpu.memory_space<vmem>>, %arg13: memref<1x256xf32, #tpu.memory_space<vmem>>, %arg14: memref<1x256xf32, #tpu.memory_space<vmem>>, %arg15: memref<24x32xf32, #tpu.memory_space<vmem>>, %arg16: memref<8x112xf32, #tpu.memory_space<vmem>>) attributes {dimension_semantics = [#tpu.dimension_semantics<parallel>, #tpu.dimension_semantics<arbitrary>], iteration_bounds = array<i64: 2, 2>, scalar_prefetch = 0 : i64, scratch_operands = 5 : i64, tpu.core_type = #tpu.core_type<tc>, window_params = [{transform_indices = @transform_0, window_bounds = array<i64: 8, 256>}, {transform_indices = @transform_1, window_bounds = array<i64: 8, 256>}, {transform_indices = @transform_2, window_bounds = array<i64: 8, 256>}, {pipeline_mode = #tpu.pipeline_mode<synchronous>, transform_indices = @transform_3, window_bounds = array<i64: 32, 16>}, {pipeline_mode = #tpu.pipeline_mode<synchronous>, transform_indices = @transform_4, window_bounds = array<i64: 1, 16>}, {pipeline_mode = #tpu.pipeline_mode<synchronous>, transform_indices = @transform_5, window_bounds = array<i64: 112, 64>}, {pipeline_mode = #tpu.pipeline_mode<synchronous>, transform_indices = @transform_6, window_bounds = array<i64: 1, 64>}, {pipeline_mode = #tpu.pipeline_mode<synchronous>, transform_indices = @transform_7, window_bounds = array<i64: 64, 128>}, {pipeline_mode = #tpu.pipeline_mode<synchronous>, transform_indices = @transform_8, window_bounds = array<i64: 1, 128>}, {transform_indices = @transform_9, window_bounds = array<i64: 8, 128>}]} {
    %c0_i32 = arith.constant 0 : i32
    %0 = arith.cmpi eq, %arg1, %c0_i32 : i32
    %1 = arith.extui %0 : i1 to i32
    %c0_i32_0 = arith.constant 0 : i32
    %2 = arith.cmpi ne, %1, %c0_i32_0 : i32
    scf.if %2 {
      %cst_21 = arith.constant 0xFF800000 : f32
      %24 = vector.broadcast %cst_21 : f32 to vector<1x256xf32>
      %c0_22 = arith.constant 0 : index
      %c0_23 = arith.constant 0 : index
      %25 = vector.load %arg12[%c0_22, %c0_23] : memref<1x256xf32, #tpu.memory_space<vmem>>, vector<1x256xf32>
      tpu.vector_store %arg12[%c0_22, %c0_23], %24 {strides = array<i32>} : memref<1x256xf32, #tpu.memory_space<vmem>>, vector<1x256xf32>,
      %c0_24 = arith.constant 0 : index
      %c0_25 = arith.constant 0 : index
      %26 = vector.load %arg13[%c0_24, %c0_25] : memref<1x256xf32, #tpu.memory_space<vmem>>, vector<1x256xf32>
      tpu.vector_store %arg13[%c0_24, %c0_25], %24 {strides = array<i32>} : memref<1x256xf32, #tpu.memory_space<vmem>>, vector<1x256xf32>,
      %c0_26 = arith.constant 0 : index
      %c0_27 = arith.constant 0 : index
      %27 = vector.load %arg14[%c0_26, %c0_27] : memref<1x256xf32, #tpu.memory_space<vmem>>, vector<1x256xf32>
      tpu.vector_store %arg14[%c0_26, %c0_27], %24 {strides = array<i32>} : memref<1x256xf32, #tpu.memory_space<vmem>>, vector<1x256xf32>,
    } else {
    }
    %c0 = arith.constant 0 : index
    %c0_1 = arith.constant 0 : index
    %3 = vector.load %arg12[%c0, %c0_1] : memref<1x256xf32, #tpu.memory_space<vmem>>, vector<1x256xf32>
    %c0_2 = arith.constant 0 : index
    %c0_3 = arith.constant 0 : index
    %4 = vector.load %arg2[%c0_2, %c0_3] : memref<8x256xf32, #tpu.memory_space<vmem>>, vector<8x256xf32>
    %cst = arith.constant dense<0xFF800000> : vector<256xf32>
    %5 = vector.multi_reduction <maximumf>, %4, %cst [0] : vector<8x256xf32> to vector<256xf32>
    %6 = vector.shape_cast %5 : vector<256xf32> to vector<1x256xf32>
    %7 = arith.maximumf %3, %6 : vector<1x256xf32>
    %c0_4 = arith.constant 0 : index
    %c0_5 = arith.constant 0 : index
    %8 = vector.load %arg12[%c0_4, %c0_5] : memref<1x256xf32, #tpu.memory_space<vmem>>, vector<1x256xf32>
    tpu.vector_store %arg12[%c0_4, %c0_5], %7 {strides = array<i32>} : memref<1x256xf32, #tpu.memory_space<vmem>>, vector<1x256xf32>,
    %c0_6 = arith.constant 0 : index
    %c0_7 = arith.constant 0 : index
    %9 = vector.load %arg13[%c0_6, %c0_7] : memref<1x256xf32, #tpu.memory_space<vmem>>, vector<1x256xf32>
    %c0_8 = arith.constant 0 : index
    %c0_9 = arith.constant 0 : index
    %10 = vector.load %arg3[%c0_8, %c0_9] : memref<8x256xf32, #tpu.memory_space<vmem>>, vector<8x256xf32>
    %cst_10 = arith.constant dense<0xFF800000> : vector<256xf32>
    %11 = vector.multi_reduction <maximumf>, %10, %cst_10 [0] : vector<8x256xf32> to vector<256xf32>
    %12 = vector.shape_cast %11 : vector<256xf32> to vector<1x256xf32>
    %13 = arith.maximumf %9, %12 : vector<1x256xf32>
    %c0_11 = arith.constant 0 : index
    %c0_12 = arith.constant 0 : index
    %14 = vector.load %arg13[%c0_11, %c0_12] : memref<1x256xf32, #tpu.memory_space<vmem>>, vector<1x256xf32>
    tpu.vector_store %arg13[%c0_11, %c0_12], %13 {strides = array<i32>} : memref<1x256xf32, #tpu.memory_space<vmem>>, vector<1x256xf32>,
    %c0_13 = arith.constant 0 : index
    %c0_14 = arith.constant 0 : index
    %15 = vector.load %arg14[%c0_13, %c0_14] : memref<1x256xf32, #tpu.memory_space<vmem>>, vector<1x256xf32>
    %c0_15 = arith.constant 0 : index
    %c0_16 = arith.constant 0 : index
    %16 = vector.load %arg4[%c0_15, %c0_16] : memref<8x256xf32, #tpu.memory_space<vmem>>, vector<8x256xf32>
    %cst_17 = arith.constant dense<0xFF800000> : vector<256xf32>
    %17 = vector.multi_reduction <maximumf>, %16, %cst_17 [0] : vector<8x256xf32> to vector<256xf32>
    %18 = vector.shape_cast %17 : vector<256xf32> to vector<1x256xf32>
    %19 = arith.maximumf %15, %18 : vector<1x256xf32>
    %c0_18 = arith.constant 0 : index
    %c0_19 = arith.constant 0 : index
    %20 = vector.load %arg14[%c0_18, %c0_19] : memref<1x256xf32, #tpu.memory_space<vmem>>, vector<1x256xf32>
    tpu.vector_store %arg14[%c0_18, %c0_19], %19 {strides = array<i32>} : memref<1x256xf32, #tpu.memory_space<vmem>>, vector<1x256xf32>,
    %c1_i32 = arith.constant 1 : i32
    %21 = arith.cmpi eq, %arg1, %c1_i32 : i32
    %22 = arith.extui %21 : i1 to i32
    %c0_i32_20 = arith.constant 0 : i32
    %23 = arith.cmpi ne, %22, %c0_i32_20 : i32
    scf.if %23 {
      %c0_21 = arith.constant 0 : index
      %c0_22 = arith.constant 0 : index
      %24 = vector.load %arg12[%c0_21, %c0_22] : memref<1x256xf32, #tpu.memory_space<vmem>>, vector<1x32xf32>
      %c0_23 = arith.constant 0 : index
      %c0_24 = arith.constant 0 : index
      %25 = vector.load %arg15[%c0_23, %c0_24] : memref<24x32xf32, #tpu.memory_space<vmem>>, vector<1x32xf32>
      tpu.vector_store %arg15[%c0_23, %c0_24], %24 {strides = array<i32>} : memref<24x32xf32, #tpu.memory_space<vmem>>, vector<1x32xf32>,
      %c0_25 = arith.constant 0 : index
      %c32 = arith.constant 32 : index
      %26 = vector.load %arg12[%c0_25, %c32] : memref<1x256xf32, #tpu.memory_space<vmem>>, vector<1x32xf32>
      %c1 = arith.constant 1 : index
      %c0_26 = arith.constant 0 : index
      %27 = vector.load %arg15[%c1, %c0_26] : memref<24x32xf32, #tpu.memory_space<vmem>>, vector<1x32xf32>
      tpu.vector_store %arg15[%c1, %c0_26], %26 {strides = array<i32>} : memref<24x32xf32, #tpu.memory_space<vmem>>, vector<1x32xf32>,
      %c0_27 = arith.constant 0 : index
      %c64 = arith.constant 64 : index
      %28 = vector.load %arg12[%c0_27, %c64] : memref<1x256xf32, #tpu.memory_space<vmem>>, vector<1x32xf32>
      %c2 = arith.constant 2 : index
      %c0_28 = arith.constant 0 : index
      %29 = vector.load %arg15[%c2, %c0_28] : memref<24x32xf32, #tpu.memory_space<vmem>>, vector<1x32xf32>
      tpu.vector_store %arg15[%c2, %c0_28], %28 {strides = array<i32>} : memref<24x32xf32, #tpu.memory_space<vmem>>, vector<1x32xf32>,
      %c0_29 = arith.constant 0 : index
      %c96 = arith.constant 96 : index
      %30 = vector.load %arg12[%c0_29, %c96] : memref<1x256xf32, #tpu.memory_space<vmem>>, vector<1x32xf32>
      %c3 = arith.constant 3 : index
      %c0_30 = arith.constant 0 : index
      %31 = vector.load %arg15[%c3, %c0_30] : memref<24x32xf32, #tpu.memory_space<vmem>>, vector<1x32xf32>
      tpu.vector_store %arg15[%c3, %c0_30], %30 {strides = array<i32>} : memref<24x32xf32, #tpu.memory_space<vmem>>, vector<1x32xf32>,
      %c0_31 = arith.constant 0 : index
      %c128 = arith.constant 128 : index
      %32 = vector.load %arg12[%c0_31, %c128] : memref<1x256xf32, #tpu.memory_space<vmem>>, vector<1x32xf32>
      %c4 = arith.constant 4 : index
      %c0_32 = arith.constant 0 : index
      %33 = vector.load %arg15[%c4, %c0_32] : memref<24x32xf32, #tpu.memory_space<vmem>>, vector<1x32xf32>
      tpu.vector_store %arg15[%c4, %c0_32], %32 {strides = array<i32>} : memref<24x32xf32, #tpu.memory_space<vmem>>, vector<1x32xf32>,
      %c0_33 = arith.constant 0 : index
      %c160 = arith.constant 160 : index
      %34 = vector.load %arg12[%c0_33, %c160] : memref<1x256xf32, #tpu.memory_space<vmem>>, vector<1x32xf32>
      %c5 = arith.constant 5 : index
      %c0_34 = arith.constant 0 : index
      %35 = vector.load %arg15[%c5, %c0_34] : memref<24x32xf32, #tpu.memory_space<vmem>>, vector<1x32xf32>
      tpu.vector_store %arg15[%c5, %c0_34], %34 {strides = array<i32>} : memref<24x32xf32, #tpu.memory_space<vmem>>, vector<1x32xf32>,
      %c0_35 = arith.constant 0 : index
      %c192 = arith.constant 192 : index
      %36 = vector.load %arg12[%c0_35, %c192] : memref<1x256xf32, #tpu.memory_space<vmem>>, vector<1x32xf32>
      %c6 = arith.constant 6 : index
      %c0_36 = arith.constant 0 : index
      %37 = vector.load %arg15[%c6, %c0_36] : memref<24x32xf32, #tpu.memory_space<vmem>>, vector<1x32xf32>
      tpu.vector_store %arg15[%c6, %c0_36], %36 {strides = array<i32>} : memref<24x32xf32, #tpu.memory_space<vmem>>, vector<1x32xf32>,
      %c0_37 = arith.constant 0 : index
      %c224 = arith.constant 224 : index
      %38 = vector.load %arg12[%c0_37, %c224] : memref<1x256xf32, #tpu.memory_space<vmem>>, vector<1x32xf32>
      %c7 = arith.constant 7 : index
      %c0_38 = arith.constant 0 : index
      %39 = vector.load %arg15[%c7, %c0_38] : memref<24x32xf32, #tpu.memory_space<vmem>>, vector<1x32xf32>
      tpu.vector_store %arg15[%c7, %c0_38], %38 {strides = array<i32>} : memref<24x32xf32, #tpu.memory_space<vmem>>, vector<1x32xf32>,
      %c0_39 = arith.constant 0 : index
      %c0_40 = arith.constant 0 : index
      %40 = vector.load %arg13[%c0_39, %c0_40] : memref<1x256xf32, #tpu.memory_space<vmem>>, vector<1x32xf32>
      %c8 = arith.constant 8 : index
      %c0_41 = arith.constant 0 : index
      %41 = vector.load %arg15[%c8, %c0_41] : memref<24x32xf32, #tpu.memory_space<vmem>>, vector<1x32xf32>
      tpu.vector_store %arg15[%c8, %c0_41], %40 {strides = array<i32>} : memref<24x32xf32, #tpu.memory_space<vmem>>, vector<1x32xf32>,
      %c0_42 = arith.constant 0 : index
      %c32_43 = arith.constant 32 : index
      %42 = vector.load %arg13[%c0_42, %c32_43] : memref<1x256xf32, #tpu.memory_space<vmem>>, vector<1x32xf32>
      %c9 = arith.constant 9 : index
      %c0_44 = arith.constant 0 : index
      %43 = vector.load %arg15[%c9, %c0_44] : memref<24x32xf32, #tpu.memory_space<vmem>>, vector<1x32xf32>
      tpu.vector_store %arg15[%c9, %c0_44], %42 {strides = array<i32>} : memref<24x32xf32, #tpu.memory_space<vmem>>, vector<1x32xf32>,
      %c0_45 = arith.constant 0 : index
      %c64_46 = arith.constant 64 : index
      %44 = vector.load %arg13[%c0_45, %c64_46] : memref<1x256xf32, #tpu.memory_space<vmem>>, vector<1x32xf32>
      %c10 = arith.constant 10 : index
      %c0_47 = arith.constant 0 : index
      %45 = vector.load %arg15[%c10, %c0_47] : memref<24x32xf32, #tpu.memory_space<vmem>>, vector<1x32xf32>
      tpu.vector_store %arg15[%c10, %c0_47], %44 {strides = array<i32>} : memref<24x32xf32, #tpu.memory_space<vmem>>, vector<1x32xf32>,
      %c0_48 = arith.constant 0 : index
      %c96_49 = arith.constant 96 : index
      %46 = vector.load %arg13[%c0_48, %c96_49] : memref<1x256xf32, #tpu.memory_space<vmem>>, vector<1x32xf32>
      %c11 = arith.constant 11 : index
      %c0_50 = arith.constant 0 : index
      %47 = vector.load %arg15[%c11, %c0_50] : memref<24x32xf32, #tpu.memory_space<vmem>>, vector<1x32xf32>
      tpu.vector_store %arg15[%c11, %c0_50], %46 {strides = array<i32>} : memref<24x32xf32, #tpu.memory_space<vmem>>, vector<1x32xf32>,
      %c0_51 = arith.constant 0 : index
      %c128_52 = arith.constant 128 : index
      %48 = vector.load %arg13[%c0_51, %c128_52] : memref<1x256xf32, #tpu.memory_space<vmem>>, vector<1x32xf32>
      %c12 = arith.constant 12 : index
      %c0_53 = arith.constant 0 : index
      %49 = vector.load %arg15[%c12, %c0_53] : memref<24x32xf32, #tpu.memory_space<vmem>>, vector<1x32xf32>
      tpu.vector_store %arg15[%c12, %c0_53], %48 {strides = array<i32>} : memref<24x32xf32, #tpu.memory_space<vmem>>, vector<1x32xf32>,
      %c0_54 = arith.constant 0 : index
      %c160_55 = arith.constant 160 : index
      %50 = vector.load %arg13[%c0_54, %c160_55] : memref<1x256xf32, #tpu.memory_space<vmem>>, vector<1x32xf32>
      %c13 = arith.constant 13 : index
      %c0_56 = arith.constant 0 : index
      %51 = vector.load %arg15[%c13, %c0_56] : memref<24x32xf32, #tpu.memory_space<vmem>>, vector<1x32xf32>
      tpu.vector_store %arg15[%c13, %c0_56], %50 {strides = array<i32>} : memref<24x32xf32, #tpu.memory_space<vmem>>, vector<1x32xf32>,
      %c0_57 = arith.constant 0 : index
      %c192_58 = arith.constant 192 : index
      %52 = vector.load %arg13[%c0_57, %c192_58] : memref<1x256xf32, #tpu.memory_space<vmem>>, vector<1x32xf32>
      %c14 = arith.constant 14 : index
      %c0_59 = arith.constant 0 : index
      %53 = vector.load %arg15[%c14, %c0_59] : memref<24x32xf32, #tpu.memory_space<vmem>>, vector<1x32xf32>
      tpu.vector_store %arg15[%c14, %c0_59], %52 {strides = array<i32>} : memref<24x32xf32, #tpu.memory_space<vmem>>, vector<1x32xf32>,
      %c0_60 = arith.constant 0 : index
      %c224_61 = arith.constant 224 : index
      %54 = vector.load %arg13[%c0_60, %c224_61] : memref<1x256xf32, #tpu.memory_space<vmem>>, vector<1x32xf32>
      %c15 = arith.constant 15 : index
      %c0_62 = arith.constant 0 : index
      %55 = vector.load %arg15[%c15, %c0_62] : memref<24x32xf32, #tpu.memory_space<vmem>>, vector<1x32xf32>
      tpu.vector_store %arg15[%c15, %c0_62], %54 {strides = array<i32>} : memref<24x32xf32, #tpu.memory_space<vmem>>, vector<1x32xf32>,
      %c0_63 = arith.constant 0 : index
      %c0_64 = arith.constant 0 : index
      %56 = vector.load %arg14[%c0_63, %c0_64] : memref<1x256xf32, #tpu.memory_space<vmem>>, vector<1x32xf32>
      %c16 = arith.constant 16 : index
      %c0_65 = arith.constant 0 : index
      %57 = vector.load %arg15[%c16, %c0_65] : memref<24x32xf32, #tpu.memory_space<vmem>>, vector<1x32xf32>
      tpu.vector_store %arg15[%c16, %c0_65], %56 {strides = array<i32>} : memref<24x32xf32, #tpu.memory_space<vmem>>, vector<1x32xf32>,
      %c0_66 = arith.constant 0 : index
      %c32_67 = arith.constant 32 : index
      %58 = vector.load %arg14[%c0_66, %c32_67] : memref<1x256xf32, #tpu.memory_space<vmem>>, vector<1x32xf32>
      %c17 = arith.constant 17 : index
      %c0_68 = arith.constant 0 : index
      %59 = vector.load %arg15[%c17, %c0_68] : memref<24x32xf32, #tpu.memory_space<vmem>>, vector<1x32xf32>
      tpu.vector_store %arg15[%c17, %c0_68], %58 {strides = array<i32>} : memref<24x32xf32, #tpu.memory_space<vmem>>, vector<1x32xf32>,
      %c0_69 = arith.constant 0 : index
      %c64_70 = arith.constant 64 : index
      %60 = vector.load %arg14[%c0_69, %c64_70] : memref<1x256xf32, #tpu.memory_space<vmem>>, vector<1x32xf32>
      %c18 = arith.constant 18 : index
      %c0_71 = arith.constant 0 : index
      %61 = vector.load %arg15[%c18, %c0_71] : memref<24x32xf32, #tpu.memory_space<vmem>>, vector<1x32xf32>
      tpu.vector_store %arg15[%c18, %c0_71], %60 {strides = array<i32>} : memref<24x32xf32, #tpu.memory_space<vmem>>, vector<1x32xf32>,
      %c0_72 = arith.constant 0 : index
      %c96_73 = arith.constant 96 : index
      %62 = vector.load %arg14[%c0_72, %c96_73] : memref<1x256xf32, #tpu.memory_space<vmem>>, vector<1x32xf32>
      %c19 = arith.constant 19 : index
      %c0_74 = arith.constant 0 : index
      %63 = vector.load %arg15[%c19, %c0_74] : memref<24x32xf32, #tpu.memory_space<vmem>>, vector<1x32xf32>
      tpu.vector_store %arg15[%c19, %c0_74], %62 {strides = array<i32>} : memref<24x32xf32, #tpu.memory_space<vmem>>, vector<1x32xf32>,
      %c0_75 = arith.constant 0 : index
      %c128_76 = arith.constant 128 : index
      %64 = vector.load %arg14[%c0_75, %c128_76] : memref<1x256xf32, #tpu.memory_space<vmem>>, vector<1x32xf32>
      %c20 = arith.constant 20 : index
      %c0_77 = arith.constant 0 : index
      %65 = vector.load %arg15[%c20, %c0_77] : memref<24x32xf32, #tpu.memory_space<vmem>>, vector<1x32xf32>
      tpu.vector_store %arg15[%c20, %c0_77], %64 {strides = array<i32>} : memref<24x32xf32, #tpu.memory_space<vmem>>, vector<1x32xf32>,
      %c0_78 = arith.constant 0 : index
      %c160_79 = arith.constant 160 : index
      %66 = vector.load %arg14[%c0_78, %c160_79] : memref<1x256xf32, #tpu.memory_space<vmem>>, vector<1x32xf32>
      %c21 = arith.constant 21 : index
      %c0_80 = arith.constant 0 : index
      %67 = vector.load %arg15[%c21, %c0_80] : memref<24x32xf32, #tpu.memory_space<vmem>>, vector<1x32xf32>
      tpu.vector_store %arg15[%c21, %c0_80], %66 {strides = array<i32>} : memref<24x32xf32, #tpu.memory_space<vmem>>, vector<1x32xf32>,
      %c0_81 = arith.constant 0 : index
      %c192_82 = arith.constant 192 : index
      %68 = vector.load %arg14[%c0_81, %c192_82] : memref<1x256xf32, #tpu.memory_space<vmem>>, vector<1x32xf32>
      %c22 = arith.constant 22 : index
      %c0_83 = arith.constant 0 : index
      %69 = vector.load %arg15[%c22, %c0_83] : memref<24x32xf32, #tpu.memory_space<vmem>>, vector<1x32xf32>
      tpu.vector_store %arg15[%c22, %c0_83], %68 {strides = array<i32>} : memref<24x32xf32, #tpu.memory_space<vmem>>, vector<1x32xf32>,
      %c0_84 = arith.constant 0 : index
      %c224_85 = arith.constant 224 : index
      %70 = vector.load %arg14[%c0_84, %c224_85] : memref<1x256xf32, #tpu.memory_space<vmem>>, vector<1x32xf32>
      %c23 = arith.constant 23 : index
      %c0_86 = arith.constant 0 : index
      %71 = vector.load %arg15[%c23, %c0_86] : memref<24x32xf32, #tpu.memory_space<vmem>>, vector<1x32xf32>
      tpu.vector_store %arg15[%c23, %c0_86], %70 {strides = array<i32>} : memref<24x32xf32, #tpu.memory_space<vmem>>, vector<1x32xf32>,
      %c0_87 = arith.constant 0 : index
      %c0_88 = arith.constant 0 : index
      %72 = vector.load %arg15[%c0_87, %c0_88] : memref<24x32xf32, #tpu.memory_space<vmem>>, vector<24x32xf32>
      %73 = arith.truncf %72 : vector<24x32xf32> to vector<24x32xbf16>
      %c0_89 = arith.constant 0 : index
      %c0_90 = arith.constant 0 : index
      %74 = vector.load %arg5[%c0_89, %c0_90] : memref<32x16xbf16, #tpu.memory_space<vmem>>, vector<32x16xbf16>
      %cst_91 = arith.constant dense<0.000000e+00> : vector<24x16xf32>
      %75 = tpu.matmul %73, %74, %cst_91 {dimension_numbers = #tpu.dot_dimension_numbers<[1], [0], [0], [1], [0, 0, 1, 1], [], []>} : vector<24x32xbf16>, vector<32x16xbf16>, vector<24x16xf32> -> vector<24x16xf32>
      %c0_92 = arith.constant 0 : index
      %c0_93 = arith.constant 0 : index
      %76 = vector.load %arg6[%c0_92, %c0_93] : memref<1x16xf32, #tpu.memory_space<vmem>>, vector<1x16xf32>
      %77 = vector.broadcast %76 : vector<1x16xf32> to vector<24x16xf32>
      %78 = arith.addf %75, %77 : vector<24x16xf32>
      %79 = vector.extract_strided_slice %78 {offsets = [0, 0], sizes = [8, 16], strides = [1, 1]} : vector<24x16xf32> to vector<8x16xf32>
      %80 = vector.extract_strided_slice %78 {offsets = [8, 0], sizes = [8, 16], strides = [1, 1]} : vector<24x16xf32> to vector<8x16xf32>
      %81 = vector.extract_strided_slice %78 {offsets = [16, 0], sizes = [8, 16], strides = [1, 1]} : vector<24x16xf32> to vector<8x16xf32>
      %c0_94 = arith.constant 0 : index
      %c0_95 = arith.constant 0 : index
      %82 = vector.load %arg16[%c0_94, %c0_95] : memref<8x112xf32, #tpu.memory_space<vmem>>, vector<8x16xf32>
      tpu.vector_store %arg16[%c0_94, %c0_95], %79 {strides = array<i32>} : memref<8x112xf32, #tpu.memory_space<vmem>>, vector<8x16xf32>,
      %c0_96 = arith.constant 0 : index
      %c16_97 = arith.constant 16 : index
      %83 = vector.load %arg16[%c0_96, %c16_97] : memref<8x112xf32, #tpu.memory_space<vmem>>, vector<8x16xf32>
      tpu.vector_store %arg16[%c0_96, %c16_97], %80 {strides = array<i32>} : memref<8x112xf32, #tpu.memory_space<vmem>>, vector<8x16xf32>,
      %c0_98 = arith.constant 0 : index
      %c32_99 = arith.constant 32 : index
      %84 = vector.load %arg16[%c0_98, %c32_99] : memref<8x112xf32, #tpu.memory_space<vmem>>, vector<8x16xf32>
      tpu.vector_store %arg16[%c0_98, %c32_99], %81 {strides = array<i32>} : memref<8x112xf32, #tpu.memory_space<vmem>>, vector<8x16xf32>,
      %85 = arith.subf %79, %80 : vector<8x16xf32>
      %86 = math.absf %85 : vector<8x16xf32>
      %c0_100 = arith.constant 0 : index
      %c48 = arith.constant 48 : index
      %87 = vector.load %arg16[%c0_100, %c48] : memref<8x112xf32, #tpu.memory_space<vmem>>, vector<8x16xf32>
      tpu.vector_store %arg16[%c0_100, %c48], %86 {strides = array<i32>} : memref<8x112xf32, #tpu.memory_space<vmem>>, vector<8x16xf32>,
      %88 = arith.mulf %79, %80 : vector<8x16xf32>
      %c0_101 = arith.constant 0 : index
      %c64_102 = arith.constant 64 : index
      %89 = vector.load %arg16[%c0_101, %c64_102] : memref<8x112xf32, #tpu.memory_space<vmem>>, vector<8x16xf32>
      tpu.vector_store %arg16[%c0_101, %c64_102], %88 {strides = array<i32>} : memref<8x112xf32, #tpu.memory_space<vmem>>, vector<8x16xf32>,
      %90 = arith.subf %79, %81 : vector<8x16xf32>
      %91 = math.absf %90 : vector<8x16xf32>
      %c0_103 = arith.constant 0 : index
      %c80 = arith.constant 80 : index
      %92 = vector.load %arg16[%c0_103, %c80] : memref<8x112xf32, #tpu.memory_space<vmem>>, vector<8x16xf32>
      tpu.vector_store %arg16[%c0_103, %c80], %91 {strides = array<i32>} : memref<8x112xf32, #tpu.memory_space<vmem>>, vector<8x16xf32>,
      %93 = arith.mulf %79, %81 : vector<8x16xf32>
      %c0_104 = arith.constant 0 : index
      %c96_105 = arith.constant 96 : index
      %94 = vector.load %arg16[%c0_104, %c96_105] : memref<8x112xf32, #tpu.memory_space<vmem>>, vector<8x16xf32>
      tpu.vector_store %arg16[%c0_104, %c96_105], %93 {strides = array<i32>} : memref<8x112xf32, #tpu.memory_space<vmem>>, vector<8x16xf32>,
      %c0_106 = arith.constant 0 : index
      %c0_107 = arith.constant 0 : index
      %95 = vector.load %arg16[%c0_106, %c0_107] : memref<8x112xf32, #tpu.memory_space<vmem>>, vector<8x112xf32>
      %96 = arith.truncf %95 : vector<8x112xf32> to vector<8x112xbf16>
      %c0_108 = arith.constant 0 : index
      %c0_109 = arith.constant 0 : index
      %97 = vector.load %arg7[%c0_108, %c0_109] : memref<112x64xbf16, #tpu.memory_space<vmem>>, vector<112x64xbf16>
      %cst_110 = arith.constant dense<0.000000e+00> : vector<8x64xf32>
      %98 = tpu.matmul %96, %97, %cst_110 {dimension_numbers = #tpu.dot_dimension_numbers<[1], [0], [0], [1], [0, 0, 1, 1], [], []>} : vector<8x112xbf16>, vector<112x64xbf16>, vector<8x64xf32> -> vector<8x64xf32>
      %c0_111 = arith.constant 0 : index
      %c0_112 = arith.constant 0 : index
      %99 = vector.load %arg8[%c0_111, %c0_112] : memref<1x64xf32, #tpu.memory_space<vmem>>, vector<1x64xf32>
      %100 = vector.broadcast %99 : vector<1x64xf32> to vector<8x64xf32>
      %101 = arith.addf %98, %100 : vector<8x64xf32>
      %cst_113 = arith.constant 0.000000e+00 : f32
      %102 = vector.broadcast %cst_113 : f32 to vector<8x64xf32>
      %103 = arith.maximumf %101, %102 : vector<8x64xf32>
      %104 = arith.truncf %103 : vector<8x64xf32> to vector<8x64xbf16>
      %c0_114 = arith.constant 0 : index
      %c0_115 = arith.constant 0 : index
      %105 = vector.load %arg9[%c0_114, %c0_115] : memref<64x128xbf16, #tpu.memory_space<vmem>>, vector<64x128xbf16>
      %cst_116 = arith.constant dense<0.000000e+00> : vector<8x128xf32>
      %106 = tpu.matmul %104, %105, %cst_116 {dimension_numbers = #tpu.dot_dimension_numbers<[1], [0], [0], [1], [0, 0, 1, 1], [], []>} : vector<8x64xbf16>, vector<64x128xbf16>, vector<8x128xf32> -> vector<8x128xf32>
      %c0_117 = arith.constant 0 : index
      %c0_118 = arith.constant 0 : index
      %107 = vector.load %arg10[%c0_117, %c0_118] : memref<1x128xf32, #tpu.memory_space<vmem>>, vector<1x128xf32>
      %108 = vector.broadcast %107 : vector<1x128xf32> to vector<8x128xf32>
      %109 = arith.addf %106, %108 : vector<8x128xf32>
      %cst_119 = arith.constant dense<0xFF800000> : vector<8xf32>
      %110 = vector.multi_reduction <maximumf>, %109, %cst_119 [1] : vector<8x128xf32> to vector<8xf32>
      %111 = vector.shape_cast %110 : vector<8xf32> to vector<8x1xf32>
      %112 = vector.broadcast %111 : vector<8x1xf32> to vector<8x128xf32>
      %113 = arith.subf %109, %112 : vector<8x128xf32>
      %114 = math.exp %113 : vector<8x128xf32>
      %cst_120 = arith.constant dense<0.000000e+00> : vector<8xf32>
      %115 = vector.multi_reduction <add>, %114, %cst_120 [1] : vector<8x128xf32> to vector<8xf32>
      %116 = vector.shape_cast %115 : vector<8xf32> to vector<8x1xf32>
      %117 = math.log %116 : vector<8x1xf32>
      %118 = vector.broadcast %117 : vector<8x1xf32> to vector<8x128xf32>
      %119 = arith.subf %113, %118 : vector<8x128xf32>
      %c0_121 = arith.constant 0 : index
      %c0_122 = arith.constant 0 : index
      %120 = vector.load %arg11[%c0_121, %c0_122] : memref<8x128xf32, #tpu.memory_space<vmem>>, vector<8x128xf32>
      tpu.vector_store %arg11[%c0_121, %c0_122], %119 {strides = array<i32>} : memref<8x128xf32, #tpu.memory_space<vmem>>, vector<8x128xf32>,
    } else {
    }
    return
  }
  func.func @transform_0(%arg0: i32, %arg1: i32) -> (i32, i32) {
    %c0_i32 = arith.constant 0 : i32
    return %arg1, %arg0 : i32, i32
  }
  func.func @transform_1(%arg0: i32, %arg1: i32) -> (i32, i32) {
    %c0_i32 = arith.constant 0 : i32
    return %arg1, %arg0 : i32, i32
  }
  func.func @transform_2(%arg0: i32, %arg1: i32) -> (i32, i32) {
    %c0_i32 = arith.constant 0 : i32
    return %arg1, %arg0 : i32, i32
  }
  func.func @transform_3(%arg0: i32, %arg1: i32) -> (i32, i32) {
    %c0_i32 = arith.constant 0 : i32
    %c0_i32_0 = arith.constant 0 : i32
    %c0_i32_1 = arith.constant 0 : i32
    return %c0_i32, %c0_i32_0 : i32, i32
  }
  func.func @transform_4(%arg0: i32, %arg1: i32) -> (i32, i32) {
    %c0_i32 = arith.constant 0 : i32
    %c0_i32_0 = arith.constant 0 : i32
    %c0_i32_1 = arith.constant 0 : i32
    return %c0_i32, %c0_i32_0 : i32, i32
  }
  func.func @transform_5(%arg0: i32, %arg1: i32) -> (i32, i32) {
    %c0_i32 = arith.constant 0 : i32
    %c0_i32_0 = arith.constant 0 : i32
    %c0_i32_1 = arith.constant 0 : i32
    return %c0_i32, %c0_i32_0 : i32, i32
  }
  func.func @transform_6(%arg0: i32, %arg1: i32) -> (i32, i32) {
    %c0_i32 = arith.constant 0 : i32
    %c0_i32_0 = arith.constant 0 : i32
    %c0_i32_1 = arith.constant 0 : i32
    return %c0_i32, %c0_i32_0 : i32, i32
  }
  func.func @transform_7(%arg0: i32, %arg1: i32) -> (i32, i32) {
    %c0_i32 = arith.constant 0 : i32
    %c0_i32_0 = arith.constant 0 : i32
    %c0_i32_1 = arith.constant 0 : i32
    return %c0_i32, %c0_i32_0 : i32, i32
  }
  func.func @transform_8(%arg0: i32, %arg1: i32) -> (i32, i32) {
    %c0_i32 = arith.constant 0 : i32
    %c0_i32_0 = arith.constant 0 : i32
    %c0_i32_1 = arith.constant 0 : i32
    return %c0_i32, %c0_i32_0 : i32, i32
  }
  func.func @transform_9(%arg0: i32, %arg1: i32) -> (i32, i32) {
    %c0_i32 = arith.constant 0 : i32
    %c0_i32_0 = arith.constant 0 : i32
    return %arg0, %c0_i32 : i32, i32
  }
}

</mosaic_0001>

<bundles_post_ra>
// kernel: tpu_custom_call.1
= control target key start
LH: loop header
LB: loop body
LE: loop exit
PB: predicated region body
PF: predicated region fallthrough
CT: control target
= control target key end

     0   :  { %s1840_s0 = inlined_call_operand.vmem [shape: f32[16,512], index: 0, kind: input, shape index: {}]   ;;  %s1841_s1 = inlined_call_operand.hbm [shape: f32[16,512], index: 1, kind: input, shape index: {}]   ;;  %s1842_s2 = inlined_call_operand.hbm [shape: f32[16,512], index: 2, kind: input, shape index: {}]   ;;  %s1843_s3 = inlined_call_operand.vmem [shape: bf16[32,16], index: 3, kind: input, shape index: {}]   ;;  %s1844_s4 = inlined_call_operand.vmem [shape: f32[1,16], index: 4, kind: input, shape index: {}]   ;;  %s1845_s5 = inlined_call_operand.vmem [shape: bf16[112,64], index: 5, kind: input, shape index: {}]   ;;  %s1846_s6 = inlined_call_operand.vmem [shape: f32[1,64], index: 6, kind: input, shape index: {}]   ;;  %s1847_s7 = inlined_call_operand.vmem [shape: bf16[64,128], index: 7, kind: input, shape index: {}]   ;;  %s1848_s8 = inlined_call_operand.vmem [shape: f32[1,128], index: 8, kind: input, shape index: {}]   ;;  %s1849_s9 = inlined_call_operand.hbm [shape: f32[16,128], index: 9, kind: output, shape index: {}]  }
   0x1   :  { %1859 = sst [smem:[#allocation24_spill]] %s1841_s1 }
   0x2   :  { %1860 = sst [smem:[#allocation25_spill]] %s1846_s6 }
   0x3   :  { %1861 = sst [smem:[#allocation26_spill]] %s1847_s7 }
   0x4   :  { %1862 = sst [smem:[#allocation27_spill]] %s1848_s8 }
   0x5   :  { %1863 = sst [smem:[#allocation28_spill]] %s1849_s9 }
   0x6   :  { %14 = vsyncpa [#allocation8], 0 }
   0x7   :  { %16 = vsyncpa [#allocation8 + $0x1], 0 }
   0x8   :  { %17 = vsyncpa [#allocation11], 0 }
   0x9   :  { %19 = vsyncpa [#allocation11 + $0x1], 0 }
   0xa   :  { %20 = vsyncpa [#allocation9], 0 }
   0xb   :  { %22 = vsyncpa [#allocation9 + $0x1], 0  ;;  %s1536_s30 = smov 0   ;;  %s1538_s10 = smov 0  }
   0xc   :  { %s1540_s11 = smov 0   ;;  %s1542_s12 = smov 0  }
   0xd   :  { %s1544_s13 = smov 0   ;;  %s1546_s14 = smov 0  }
   0xe   :  { %s1548_s15 = smov 0   ;;  %s1550_s16 = smov 0  }
   0xf   :  { %s1552_s17 = smov 0   ;;  %s1554_s18 = smov 0  }
  0x10   :  { %s1556_s19 = smov 0  }
  0x11 LB: > { %1864 = sst [smem:[#allocation16_spill]] %s1457_s14  ;;  %s1058_s20 = sadd.s32 4294967295, %s1477_s19   ;;  %s1477_s19 = sphi %s1556_s19, %s28_s19   ;;  %s1473_s18 = sphi %s1554_s18, %s1889_s18   ;;  %s1469_s17 = sphi %s1552_s17, %s1888_s17   ;;  %s1465_s16 = sphi %s1550_s16, %s1887_s16   ;;  %s1461_s15 = sphi %s1548_s15, %s1886_s15   ;;  %s1457_s14 = sphi %s1546_s14, %s1885_s14   ;;  %s1453_s13 = sphi %s1544_s13, %s1894_s13   ;;  %s1449_s12 = sphi %s1542_s12, %s1893_s12   ;;  %s1445_s11 = sphi %s1540_s11, %s1892_s11   ;;  %s1441_s10 = sphi %s1538_s10, %s1891_s10   ;;  %s1437_s30 = sphi %s1536_s30, %s1890_s30  }
  0x12   : > { %1865 = sst [smem:[#allocation17_spill]] %s1469_s17  ;;  %s1059_s21 = sadd.s32 4294967294, %s1477_s19  }
  0x13   : > { %1866 = sst [smem:[#allocation18_spill]] %s1473_s18  ;;  %s37_s22 = sadd.s32 1, %s1469_s17 }
  0x14   : > { %s40_s23 = sadd.s32 1, %s1473_s18  ;;  %p38_p0 = scmp.ge.s32.totalorder %s37_s22, 2 }
  0x15   : > { %s77_s24 = sadd.s32 1, %s1457_s14  ;;  %p84_p1 = scmp.ne.s32.totalorder %s1457_s14, %s1453_s13 }
  0x16   : > { %p85_p2 = scmp.eq.s32.totalorder %s1477_s19, 0  ;;  %s1896_s22 = smov (%p38_p0, %s37_s22), 0 }
  0x17   : > { %1867 = sst [smem:[#allocation19_spill]] %s1896_s22  ;;  %s1898_s23 = smov (!%p38_p0, %s40_s23), %s1473_s18 }
  0x18   : > { %s72_s25 = ssub.s32 %s1469_s17, %s1896_s22  ;;  %p1602_p3 = por %p85_p2, %p84_p1 }
  0x19   : > { %p42_p4 = scmp.ge.s32.totalorder %s1898_s23, 2  ;;  %p90_p5 = scmp.ne.s32.totalorder %s1453_s13, %s1449_s12 }
  0x1a   : > { %p91_p6 = scmp.eq.s32.totalorder %s1058_s20, 0  ;;  %s257_s27 = sadd.s32 1, %s1445_s11 }
  0x1b   : > { %s1900_s23 = smov (%p42_p4, %s1898_s23), 0  ;;  %p267_p8 = scmp.ne.s32.totalorder %s1445_s11, %s1441_s10 }
  0x1c   : > { %1869 = sst [smem:[#allocation20_spill]] %s1900_s23  ;;  %p1610_p7 = por %p91_p6, %p90_p5 }
  0x1d   : > { %s73_s29 = ssub.s32 %s1473_s18, %s1900_s23  ;;  %p268_p9 = scmp.eq.s32.totalorder %s1058_s20, 3 }
  0x1e   : > { %s74_s22 = sor.u32 %s73_s29, %s72_s25  ;;  %p255_p10 = scmp.eq.s32.totalorder %s73_s29, 0 }
  0x1f   : > { %p75_p11 = scmp.eq.s32.totalorder %s74_s22, 0  ;;  %p1618_p12 = por %p268_p9, %p267_p8 }
  0x20   : > { %s1623_s9 = scalar_select %p255_p10, %s1445_s11, %s257_s27  }
  0x21   : > { %s1871_s12 = scalar_select %p1618_p12, 1, 0 }
  0x22   : > { %1873 = sst [smem:[#allocation22_spill]] %s1623_s9  ;;  %p273_p13 = scmp.ne.s32.totalorder %s1441_s10, %s1437_s30 }
  0x23   : > { %1872 = sst [smem:[#allocation21_spill]] %s1871_s12  ;;  %p274_p0 = scmp.eq.s32.totalorder %s1059_s21, 3 }
  0x24   : > { %s1626_s8 = scalar_select %p75_p11, %s1457_s14, %s77_s24  }
  0x25   : > { %p1169_p1 = scmp.lt.s32.totalorder %s1477_s19, 4  ;;  %p1631_p2 = por %p274_p0, %p273_p13 }
  0x26   : > { %1874 = sst [smem:[#allocation23_spill]] %s1626_s8  ;;  %s325_s20 = sand.u32 1, %s1457_s14  }
  0x27   : > { %s1062_s22 = sshll.u32 %s325_s20, 4  ;;  %s1063_s25 = sshll.u32 %s1473_s18, 1 }
  0x28   : > { %s1064_s29 = sshll.u32 %s1469_s17, 2  ;;  %s329_s6 = scalar_lea.vmem [#allocation7], %s1062_s22 }
  0x29   : > { %s340_s12 = sshll.u32 %s329_s6, 4  ;;  %s334_s7 = sadd.s32 %s1064_s29, %s1063_s25  ;;  %s341_s12 = int_to_ptr.vmem [resolvable:$true] %s340_s12 }
  0x2a   : > { %s1065_s27 = sshll.u32 %s334_s7, 3  ;;  %p1640_p4 = pnand %p1169_p1, %p1602_p3 }
  0x2b   : > { %s1877_s1 = sld [smem:[#allocation24_spill]]  ;;  %p1070_p5 = scmp.ge.s32.totalorder %s1477_s19, 1 }
  0x2c   : > { %p367_p6 = scmp.lt.s32.totalorder %s1477_s19, 5  ;;  %s326_s18 = scalar_lea.sflag [#allocation8], %s325_s20 }
  0x2d   : > { %s358_s26 = scalar_lea.hbm %s1842_s2, %s1065_s27  ;;  %s351_s29 = scalar_lea.vmem [#allocation10], %s1062_s22 }
  0x2e   : > { %p368_p8 = pnand %p1070_p5, %p367_p6  ;;  %s360_s25 = sshll.u32 %s358_s26, 4  ;;  %s361_s25 = int_to_ptr.hbm [resolvable:$true] %s360_s25 }
  0x2f   : > { %s362_s17 = sshll.u32 %s351_s29, 4  ;;  %s348_s8 = scalar_lea.sflag [#allocation11], %s325_s20  ;;  %s363_s17 = int_to_ptr.vmem [resolvable:$true] %s362_s17 }
  0x30   : > { %1164 = dma.hbm_to_vmem [thread:$0]  (!%p1640_p4), %s361_s25, 256, %s363_s17, %s348_s8  }
  0x31   : > { %s336_s9 = scalar_lea.hbm %s1877_s1, %s1065_s27  ;;  %371 = sbr.rel (%p368_p8) target bundleno = 1069 (0x42d), region = 56 }
  0x32   : > { %s338_s14 = sshll.u32 %s336_s9, 4  ;;  %s373_s9 = sand.u32 (!%p368_p8), 1, %s1453_s13   ;;  %s339_s14 = int_to_ptr.hbm [resolvable:$true] %s338_s14 }
  0x33   : > { %1161 = dma.hbm_to_vmem [thread:$0]  (!%p1640_p4), %s339_s14, 256, %s341_s12, %s326_s18  }
  0x34   : > { %s1071_s21 = sshll.u32 (!%p368_p8), %s373_s9, 4  ;;  %s374_s1 = scalar_lea.sflag (!%p368_p8), [#allocation8], %s373_s9 }
  0x35   : > { %s1657_s14 = scalar_lea.vmem (!%p368_p8), [#allocation7], %s1071_s21 }
  0x36   : > { %1424 = dma.done.wait (%p1610_p7), %s374_s1, 256  }
  0x37   : > { %1426 = vsyncadd (%p1610_p7), %s374_s1, 4294967040  ;;  %s384_s18 = scalar_lea.sflag [#allocation11], %s373_s9  ;;  %s1663_s12 = scalar_lea.vmem [#allocation10], %s1071_s21 }
  0x38   : > { %1428 = dma.done.wait (%p1610_p7), %s384_s18, 256  }
  0x39   : > { %1430 = vsyncadd (%p1610_p7), %s384_s18, 4294967040  ;;  %s434_s17 = sand.u32 1, %s1441_s10   ;;  %s1074_s20 = sshll.u32 %s1465_s16, 1 }
  0x3a   : > { %s1673_s22 = sshll.u32 %s434_s17, 3  ;;  %p438_p3 = scmp.lt.s32.totalorder %s1461_s15, 1 }
  0x3b   : > { %p440_p9 = scmp.lt.s32.totalorder %s1074_s20, 3  ;;  %s436_s25 = scalar_lea.vmem [#allocation12], %s1673_s22 }
  0x3c   : > { %s439_s1 = scalar_select %p438_p3, %s1461_s15, 1 }
  0x3d   : > { %s1902_s20 = smov (!%p440_p9, %s1074_s20), 3  ;;  %p1077_p7 = scmp.ne.s32.totalorder %s1461_s15, 0 }
  0x3e   : > { %s1075_s27 = sshll.u32 %s439_s1, 2 }
  0x3f   : > { %s443_s24 = sadd.s32 %s1075_s27, %s1902_s20  ;;  %453 = sbr.rel (%p1077_p7) target bundleno = 74 (0x4a), region = 68 }
  0x40   : > { %s1076_s6 = sshll.u32 %s443_s24, 3 }
  0x41   : > { %s445_s26 = scalar_lea.vmem %s1840_s0, %s1076_s6 }
  0x44   : > { %v454_v0 = vlaneseq  ;;  %v1479_v1 = vmov -inf  }
  0x46   : > { %vm456_vm0 = vcmp.lt.s32.totalorder %v454_v0, 256 }
  0x47   : > { %458 = vst.msk [vmem:[#allocation2] sm:$0x3] %vm456_vm0, %v1479_v1 }
  0x48   : > { %459 = vst.msk [vmem:[#allocation3] sm:$0x3] %vm456_vm0, %v1479_v1 }
  0x49   : > { %460 = vst.msk [vmem:[#allocation4] sm:$0x3] %vm456_vm0, %v1479_v1 }
  0x4a PF: > { %v462_v2 = vld [vmem:[%s445_s26] sm:$0xff]  ;;  %v463_v3 = vld [vmem:[%s445_s26 + $0x8] sm:$0xff]  ;;  %v483_v38 = vlaneseq  ;;  %vm479_vm1 = vcmask 1040384   ;;  %p1078_p10 = scmp.ne.s32.totalorder %s1461_s15, 1 }
  0x4b   : > { %v464_v4 = vrot.slane %v462_v2, 4  ;;  %v470_v5 = vrot.slane %v463_v3, 4  ;;  %v489_v6 = vld [vmem:[%s1657_s14] sm:$0xff]  ;;  %v490_v7 = vld [vmem:[%s1657_s14 + $0x8] sm:$0xff]  ;;  %s1480_s29 = smov (!%p1078_p10), 32   ;;  %s1481_s8 = smov (!%p1078_p10), 96  }
  0x4c   : > { %v491_v8 = vrot.slane %v489_v6, 4  ;;  %v497_v9 = vrot.slane %v490_v7, 4  ;;  %v511_v10 = vld [vmem:[%s1663_s12] sm:$0xff]  ;;  %v512_v13 = vld [vmem:[%s1663_s12 + $0x8] sm:$0xff]  ;;  %vm485_vm2 = vcmp.lt.s32.totalorder %v483_v38, 256  ;;  %s1482_s9 = smov (!%p1078_p10), 64  }
  0x4d   : > { %v465_v11 = vmax.f32 %v462_v2, %v464_v4  ;;  %v471_v12 = vmax.f32 %v463_v3, %v470_v5  ;;  %v513_v14 = vrot.slane %v511_v10, 4  ;;  %v519_v17 = vrot.slane %v512_v13, 4  ;;  %s1483_s1 = smov (!%p1078_p10), 16   ;;  %s1484_s27 = smov (!%p1078_p10), 48  }
  0x4e   : > { %v492_v15 = vmax.f32 %v489_v6, %v491_v8  ;;  %v498_v16 = vmax.f32 %v490_v7, %v497_v9  ;;  %v461_v43 = vld [vmem:[#allocation2] sm:$0x3]  ;;  %s1485_s24 = smov (!%p1078_p10), 80   ;;  %s1878_s6 = sld [smem:[#allocation26_spill]] (!%p1078_p10) }
  0x4f   : > { %v466_v18 = vrot.slane %v465_v11, 2  ;;  %v472_v19 = vrot.slane %v471_v12, 2  ;;  %v514_v20 = vmax.f32 %v511_v10, %v513_v14  ;;  %v520_v23 = vmax.f32 %v512_v13, %v519_v17  ;;  %v488_v45 = vld [vmem:[#allocation3] sm:$0x3]  ;;  %s1879_s14 = sld [smem:[#allocation25_spill]] (!%p1078_p10) }
  0x50   : > { %v493_v21 = vrot.slane %v492_v15, 2  ;;  %v499_v22 = vrot.slane %v498_v16, 2  ;;  %v510_v52 = vld [vmem:[#allocation4] sm:$0x3]  ;;  %s1880_s20 = sld [smem:[#allocation27_spill]] (!%p1078_p10) }
  0x51   : > { %v467_v24 = vmax.f32 %v465_v11, %v466_v18  ;;  %v473_v25 = vmax.f32 %v471_v12, %v472_v19  ;;  %v515_v26 = vrot.slane %v514_v20, 2  ;;  %v521_v29 = vrot.slane %v520_v23, 2 }
  0x52   : > { %v494_v27 = vmax.f32 %v492_v15, %v493_v21  ;;  %v500_v28 = vmax.f32 %v498_v16, %v499_v22 }
  0x53   : > { %v468_v30 = vrot.slane %v467_v24, 1  ;;  %v474_v31 = vrot.slane %v473_v25, 1  ;;  %v516_v32 = vmax.f32 %v514_v20, %v515_v26  ;;  %v522_v35 = vmax.f32 %v520_v23, %v521_v29 }
  0x54   : > { %v495_v33 = vrot.slane %v494_v27, 1  ;;  %v501_v34 = vrot.slane %v500_v28, 1 }
  0x55   : > { %v469_v36 = vmax.f32 %v467_v24, %v468_v30  ;;  %v475_v37 = vmax.f32 %v473_v25, %v474_v31  ;;  %v517_v39 = vrot.slane %v516_v32, 1  ;;  %v523_v42 = vrot.slane %v522_v35, 1 }
  0x56   : > { %v496_v40 = vmax.f32 %v494_v27, %v495_v33  ;;  %v502_v41 = vmax.f32 %v500_v28, %v501_v34 }
  0x57   : > { %v478_v44 = vrot.slane %v475_v37, 7  ;;  %v518_v47 = vmax.f32 %v516_v32, %v517_v39  ;;  %v524_v48 = vmax.f32 %v522_v35, %v523_v42 }
  0x58   : > { %v505_v46 = vrot.slane %v502_v41, 7 }
  0x59   : > { %v480_v49 = vsel %vm479_vm1, %v469_v36, %v478_v44  ;;  %v527_v53 = vrot.slane %v524_v48, 7 }
  0x5a   : > { %v482_v50 = vmax.f32 %v461_v43, %v480_v49  ;;  %v506_v51 = vsel %vm479_vm1, %v496_v40, %v505_v46  ;;  %535 = sbr.rel (%p1078_p10) target bundleno = 1049 (0x419), region = 72 }
  0x5b   : > { %v508_v54 = vmax.f32 %v488_v45, %v506_v51  ;;  %v528_v55 = vsel %vm479_vm1, %v518_v47, %v527_v53 }
  0x5c   : > { %487 = vst.msk [vmem:[#allocation2] sm:$0x3] %vm485_vm2, %v482_v50  ;;  %v530_v56 = vmax.f32 %v510_v52, %v528_v55 }
  0x5d   : > { %509 = vst.msk [vmem:[#allocation3] sm:$0x3] %vm485_vm2, %v508_v54 }
  0x5e   : > { %531 = vst.msk [vmem:[#allocation4] sm:$0x3] %vm485_vm2, %v530_v56 }
  0x5f   : > { %vm537_vm3 = vcmask 253952   ;;  %v1140_v17 = vld [vmem:[%s1843_s3 + $0x8] sm:$0xff]  ;;  %v1139_v18 = vld [vmem:[%s1843_s3] sm:$0xff]  ;;  %vm700_vm4 = vcmask 261120   ;;  %vm725_vm5 = vcmask 130048   ;;  %v1147_v56 = vld [vmem:[%s1845_s5 + $0x30] sm:$0xff] }
  0x60   : > { %713 = vmatpush.bf16.msra.mxu0 %v1140_v17  ;;  %v1284_v42 = vld [vmem:[%s1844_s4] ss:$0 sm:$0xff]  ;;  %836 = vmatpush.bf16.msra.mxu1 %v1147_v56  ;;  %vm731_vm6 = vcmask 261248   ;;  %vm737_vm7 = vcmask 392448   ;;  %vm745_vm8 = vcmask 523648   ;;  %vm752_vm9 = vcmask 654848  }
  0x61   : > { %vm760_vm10 = vcmask 786048   ;;  %vm767_vm11 = vcmask 917248   ;;  %vm831_vm12 = vcmask 916480   ;;  %vm886_vm13 = vcmask 523264   ;;  %v1286_v17 = vld [vmem:[%s1880_s20] ss:$0 sm:$0xff] }
  0x63   : > { %v1266_v57 = vld [vmem:[#allocation2] ss:$0 sm:$0xff]  ;;  %v1268_v59 = vld [vmem:[#allocation2 + $0x1] ss:$0 sm:$0xff] }
  0x64   : > { %v1267_v58 = vld [vmem:[#allocation2] ss:$0 sm:$0xff]  ;;  %556 = vrot.lane.b32.xlu1 %v1266_v57, %s1480_s29  ;;  %v1272_v60 = vld [vmem:[#allocation2 + $0x1] ss:$0 sm:$0xff]  ;;  %v1270_v63 = vld [vmem:[#allocation3] ss:$0 sm:$0xff]  ;;  %714 = vmatpush.bf16.msra.mxu0 %v1139_v18 }
  0x65   : > { %542 = vrot.lane.b32.xlu0 %v1267_v58, %s1481_s8  ;;  %v1269_v61 = vld [vmem:[#allocation2] ss:$0 sm:$0xff]  ;;  %572 = vrot.lane.b32.xlu2 %v1272_v60, %s1482_s9  ;;  %v1275_v62 = vld [vmem:[#allocation2 + $0x1] ss:$0 sm:$0xff]  ;;  %v1271_v0 = vld [vmem:[#allocation3] ss:$0 sm:$0xff] }
  0x66   : > { %v1278_v1 = vld [vmem:[#allocation3] ss:$0 sm:$0xff]  ;;  %v1273_v2 = vld [vmem:[#allocation3 + $0x1] ss:$0 sm:$0xff]  ;;  %v1276_v5 = vld [vmem:[#allocation4] ss:$0 sm:$0xff] }
  0x67   : > { %v1274_v3 = vld [vmem:[#allocation3 + $0x1] ss:$0 sm:$0xff]  ;;  %v1277_v6 = vld [vmem:[#allocation4] ss:$0 sm:$0xff]  ;;  %v1279_v8 = vld [vmem:[#allocation4 + $0x1] ss:$0 sm:$0xff] }
  0x68   : > { %v1281_v4 = vld [vmem:[#allocation3 + $0x1] ss:$0 sm:$0xff]  ;;  %v1282_v7 = vld [vmem:[#allocation4] ss:$0 sm:$0xff]  ;;  %v1280_v9 = vld [vmem:[#allocation4 + $0x1] ss:$0 sm:$0xff] }
  0x69   : > { %v1283_v10 = vld [vmem:[#allocation4 + $0x1] ss:$0 sm:$0xff]  ;;  %v536_v11 = vld [vmem:[#allocation2] sm:$0x1]  ;;  %v560_v12 = vld [vmem:[#allocation2 + $0x1] sm:$0x1] }
  0x6a   : > { %538 = vst.msk [vmem:[#allocation5] sm:$0x1] %vm537_vm3, %v536_v11  ;;  %v583_v15 = vld [vmem:[#allocation3] sm:$0x1]  ;;  %v606_v16 = vld [vmem:[#allocation3 + $0x1] sm:$0x1] }
  0x6b   : > { %561 = vst.msk [vmem:[#allocation5 + $0x4] sm:$0x1] %vm537_vm3, %v560_v12  ;;  %v629_v25 = vld [vmem:[#allocation4] sm:$0x1]  ;;  %v652_v26 = vld [vmem:[#allocation4 + $0x1] sm:$0x1] }
  0x6c   : > { %565 = vrot.lane.b32.xlu1 %v1268_v59, %s1481_s8  ;;  %584 = vst.msk [vmem:[#allocation5 + $0x8] sm:$0x1] %vm537_vm3, %v583_v15  ;;  %v1146_v57 = vld [vmem:[%s1845_s5 + $0x28] sm:$0xff]  ;;  %v1145_v58 = vld [vmem:[%s1845_s5 + $0x20] sm:$0xff]  ;;  %v1144_v59 = vld [vmem:[%s1845_s5 + $0x18] sm:$0xff] }
  0x6d   : > { %549 = vrot.lane.b32.xlu0 %v1269_v61, %s1482_s9  ;;  %579 = vrot.lane.b32.xlu2 %v1275_v62, %s1480_s29  ;;  %607 = vst.msk [vmem:[#allocation5 + $0xc] sm:$0x1] %vm537_vm3, %v606_v16  ;;  %v1143_v60 = vld [vmem:[%s1845_s5 + $0x10] sm:$0xff]  ;;  %v1142_v61 = vld [vmem:[%s1845_s5 + $0x8] sm:$0xff] }
  0x6e   : > { %630 = vst.msk [vmem:[#allocation5 + $0x10] sm:$0x1] %vm537_vm3, %v629_v25  ;;  %837 = vmatpush.bf16.msra.mxu1 %v1146_v57  ;;  %v1141_v62 = vld [vmem:[%s1845_s5] sm:$0xff] }
  0x6f   : > { %653 = vst.msk [vmem:[#allocation5 + $0x14] sm:$0x1] %vm537_vm3, %v652_v26  ;;  %v1285_v11 = vld [vmem:[%s1879_s14] ss:$0 sm:$0xff] }
  0x72   : > { %838 = vmatpush.bf16.msra.mxu1 %v1145_v58 }
  0x74   : > { %595 = vrot.lane.b32.xlu1 %v1270_v63, %s1482_s9  ;;  %v1151_v63 = vld [vmem:[%s1878_s6 + $0x18] sm:$0xff] }
  0x75   : > { %588 = vrot.lane.b32.xlu0 %v1271_v0, %s1481_s8  ;;  %602 = vrot.lane.b32.xlu2 %v1278_v1, %s1480_s29  ;;  %v1150_v0 = vld [vmem:[%s1878_s6 + $0x10] sm:$0xff] }
  0x76   : > { %839 = vmatpush.bf16.msra.mxu1 %v1144_v59  ;;  %894 = vmatpush.bf16.msra.mxu2 %v1151_v63 }
  0x7a   : > { %840 = vmatpush.bf16.msra.mxu1 %v1143_v60  ;;  %895 = vmatpush.bf16.msra.mxu2 %v1150_v0 }
  0x7c   : > { %618 = vrot.lane.b32.xlu1 %v1273_v2, %s1482_s9 }
  0x7d   : > { %611 = vrot.lane.b32.xlu0 %v1274_v3, %s1481_s8  ;;  %625 = vrot.lane.b32.xlu2 %v1281_v4, %s1480_s29 }
  0x7e   : > { %841 = vmatpush.bf16.msra.mxu1 %v1142_v61 }
  0x82   : > { %842 = vmatpush.bf16.msra.mxu1 %v1141_v62 }
  0x84   : > { %641 = vrot.lane.b32.xlu1 %v1276_v5, %s1482_s9 }
  0x85   : > { %634 = vrot.lane.b32.xlu0 %v1277_v6, %s1481_s8  ;;  %648 = vrot.lane.b32.xlu2 %v1282_v7, %s1480_s29 }
  0x8c   : > { %664 = vrot.lane.b32.xlu1 %v1279_v8, %s1482_s9 }
  0x8d   : > { %657 = vrot.lane.b32.xlu0 %v1280_v9, %s1481_s8  ;;  %671 = vrot.lane.b32.xlu2 %v1283_v10, %s1480_s29  ;;  %v1149_v9 = vld [vmem:[%s1878_s6 + $0x8] sm:$0xff]  ;;  %v1148_v10 = vld [vmem:[%s1878_s6] sm:$0xff] }
  0x8e   : > { %896 = vmatpush.bf16.msra.mxu2 %v1149_v9 }
  0x92   : > { %897 = vmatpush.bf16.msra.mxu2 %v1148_v10 }
  0xbf   : > { %v573_v13 = vpop.permute.xlu2 %572 }
  0xc0   : > { %575 = vst.msk [vmem:[#allocation5 + $0x6] sm:$0x1] %vm537_vm3, %v573_v13 }
  0xc7   : > { %v580_v14 = vpop.permute.xlu2 %579 }
  0xc8   : > { %582 = vst.msk [vmem:[#allocation5 + $0x7] sm:$0x1] %vm537_vm3, %v580_v14 }
  0xcf   : > { %v603_v19 = vpop.permute.xlu2 %602 }
  0xd0   : > { %605 = vst.msk [vmem:[#allocation5 + $0xb] sm:$0x1] %vm537_vm3, %v603_v19 }
  0xd6   : > { %v557_v20 = vpop.permute.xlu1 %556 }
  0xd7   : > { %559 = vst.msk [vmem:[#allocation5 + $0x3] sm:$0x1] %vm537_vm3, %v557_v20  ;;  %v543_v21 = vpop.permute.xlu0 %542  ;;  %v626_v22 = vpop.permute.xlu2 %625 }
  0xd8   : > { %545 = vst.msk [vmem:[#allocation5 + $0x1] sm:$0x1] %vm537_vm3, %v543_v21 }
  0xd9   : > { %628 = vst.msk [vmem:[#allocation5 + $0xf] sm:$0x1] %vm537_vm3, %v626_v22 }
  0xde   : > { %v566_v23 = vpop.permute.xlu1 %565 }
  0xdf   : > { %568 = vst.msk [vmem:[#allocation5 + $0x5] sm:$0x1] %vm537_vm3, %v566_v23  ;;  %v550_v24 = vpop.permute.xlu0 %549  ;;  %v649_v27 = vpop.permute.xlu2 %648 }
  0xe0   : > { %552 = vst.msk [vmem:[#allocation5 + $0x2] sm:$0x1] %vm537_vm3, %v550_v24 }
  0xe1   : > { %651 = vst.msk [vmem:[#allocation5 + $0x13] sm:$0x1] %vm537_vm3, %v649_v27 }
  0xe6   : > { %v596_v28 = vpop.permute.xlu1 %595 }
  0xe7   : > { %598 = vst.msk [vmem:[#allocation5 + $0xa] sm:$0x1] %vm537_vm3, %v596_v28  ;;  %v589_v29 = vpop.permute.xlu0 %588  ;;  %v672_v30 = vpop.permute.xlu2 %671  ;;  %v675_v35 = vld [vmem:[#allocation5] sm:$0xff] }
  0xe8   : > { %591 = vst.msk [vmem:[#allocation5 + $0x9] sm:$0x1] %vm537_vm3, %v589_v29 }
  0xe9   : > { %674 = vst.msk [vmem:[#allocation5 + $0x17] sm:$0x1] %vm537_vm3, %v672_v30 }
  0xee   : > { %v619_v31 = vpop.permute.xlu1 %618 }
  0xef   : > { %621 = vst.msk [vmem:[#allocation5 + $0xe] sm:$0x1] %vm537_vm3, %v619_v31  ;;  %v612_v32 = vpop.permute.xlu0 %611 }
  0xf0   : > { %614 = vst.msk [vmem:[#allocation5 + $0xd] sm:$0x1] %vm537_vm3, %v612_v32 }
  0xf6   : > { %v642_v33 = vpop.permute.xlu1 %641 }
  0xf7   : > { %644 = vst.msk [vmem:[#allocation5 + $0x12] sm:$0x1] %vm537_vm3, %v642_v33  ;;  %v635_v34 = vpop.permute.xlu0 %634  ;;  %v676_v36 = vld [vmem:[#allocation5 + $0x8] sm:$0xff] }
  0xf8   : > { %637 = vst.msk [vmem:[#allocation5 + $0x11] sm:$0x1] %vm537_vm3, %v635_v34  ;;  %v678_v37 = vpack.c.bf16 %v676_v36, %v675_v35 }
  0xfa   : > { %1087 = vmatmul.msk.bf16.vlgmr.msra.gmra.mxu0 %vm700_vm4, %v678_v37 }
  0xfe   : > { %v665_v38 = vpop.permute.xlu1 %664 }
  0xff   : > { %667 = vst.msk [vmem:[#allocation5 + $0x16] sm:$0x1] %vm537_vm3, %v665_v38  ;;  %v658_v39 = vpop.permute.xlu0 %657 }
 0x100   : > { %660 = vst.msk [vmem:[#allocation5 + $0x15] sm:$0x1] %vm537_vm3, %v658_v39 }
 0x107   : > { %v677_v40 = vld [vmem:[#allocation5 + $0x10] sm:$0xff] }
 0x108   : > { %v679_v41 = vpack.c.bf16 %v677_v40, %v677_v40 }
 0x10a   : > { %1088 = vmatmul.msk.bf16.gmra.mxu0 %vm700_vm4, %v679_v41 }
 0x177   : > { %v716_v43 = vpop.f32.mrf.mxu0 }
 0x178   : > { %v717_v44 = vadd.f32 %v1284_v42, %v716_v43 }
 0x17a   : > { %726 = vst.msk [vmem:[#allocation6] sm:$0xff] %vm725_vm5, %v717_v44 }
 0x17f   : > { %v718_v45 = vpop.f32.mrf.mxu0 }
 0x180   : > { %v719_v46 = vadd.f32 %v1284_v42, %v718_v45 }
 0x182   : > { %728 = vrot.lane.b32.xlu0 %v719_v46, %s1483_s1  ;;  %v739_v47 = vsub.f32 %v717_v44, %v719_v46  ;;  %v747_v51 = vmul.f32 %v719_v46, %v717_v44 }
 0x184   : > { %v740_v48 = vand.u32 2147483647, %v739_v47 }
 0x186   : > { %742 = vrot.lane.b32.xlu2 %v740_v48, %s1484_s27 }
 0x187   : > { %v721_v49 = vpop.f32.mrf.mxu0 }
 0x188   : > { %v722_v50 = vadd.f32 %v1284_v42, %v721_v49 }
 0x18a   : > { %734 = vrot.lane.b32.xlu1 %v722_v50, %s1480_s29  ;;  %749 = vrot.lane.b32.xlu0 %v747_v51, %s1482_s9  ;;  %v762_v52 = vmul.f32 %v722_v50, %v717_v44  ;;  %v754_v53 = vsub.f32 %v717_v44, %v722_v50 }
 0x18c   : > { %v755_v55 = vand.u32 2147483647, %v754_v53 }
 0x18e   : > { %764 = vrot.lane.b32.xlu2 %v762_v52, %s1481_s8 }
 0x18f   : > { %v723_v54 = vpop.f32.mrf.mxu0 }
 0x192   : > { %757 = vrot.lane.b32.xlu1 %v755_v55, %s1485_s24 }
 0x1e0   : > { %v743_v2 = vpop.permute.xlu2 %742 }
 0x1e8   : > { %v765_v6 = vpop.permute.xlu2 %764 }
 0x1f4   : > { %v729_v1 = vpop.permute.xlu0 %728 }
 0x1f5   : > { %732 = vst.msk [vmem:[#allocation6] sm:$0xff] %vm731_vm6, %v729_v1 }
 0x1fc   : > { %v735_v3 = vpop.permute.xlu1 %734  ;;  %v750_v4 = vpop.permute.xlu0 %749 }
 0x1fd   : > { %738 = vst.msk [vmem:[#allocation6] sm:$0xff] %vm737_vm7, %v735_v3 }
 0x1fe   : > { %746 = vst.msk [vmem:[#allocation6] sm:$0xff] %vm745_vm8, %v743_v2 }
 0x1ff   : > { %753 = vst.msk [vmem:[#allocation6] sm:$0xff] %vm752_vm9, %v750_v4 }
 0x204   : > { %v758_v5 = vpop.permute.xlu1 %757 }
 0x205   : > { %761 = vst.msk [vmem:[#allocation6] sm:$0xff] %vm760_vm10, %v758_v5 }
 0x206   : > { %768 = vst.msk [vmem:[#allocation6] sm:$0xff] %vm767_vm11, %v765_v6 }
 0x20d   : > { %v769_v7 = vld [vmem:[#allocation6] sm:$0xff] }
 0x20e   : > { %v770_v8 = vpack.c.bf16 %v769_v7, %v769_v7 }
 0x210   : > { %1117 = vmatmul.msk.bf16.vlgmr.msra.gmra.mxu1 %vm831_vm12, %v770_v8 }
 0x28d   : > { %v844_v12 = vpop.f32.mrf.mxu1 }
 0x28e   : > { %v845_v13 = vadd.f32 %v1285_v11, %v844_v12 }
 0x290   : > { %v848_v14 = vmax.f32 %v845_v13, 0.0 }
 0x292   : > { %v849_v15 = vpack.c.bf16 %v848_v14, %v848_v14 }
 0x294   : > { %1134 = vmatmul.msk.bf16.vlgmr.msra.gmra.mxu2 %vm886_vm13, %v849_v15 }
 0x295   : > { %v846_v16 = vpop.f32.mrf.mxu1 }
 0x317   : > { %v899_v18 = vpop.f32.mrf.mxu2 }
 0x318   : > { %v900_v19 = vadd.f32 %v1286_v17, %v899_v18 }
 0x31a   : > { %903 = vmax.xlane.f32.xlu0 %v900_v19 }
 0x31f   : > { %v901_v20 = vpop.f32.mrf.mxu2 }
 0x38d   : > { %v904_v21 = vpop.xlane.xlu0 %903 }
 0x38e   : > { %v905_v22 = vsub.f32 %v900_v19, %v904_v21 }
 0x390   : > { %v906_v23 = vmul.f32 1.442695, %v905_v22 }
 0x392   : > { %1287 = vpow2.f32 %v906_v23 }
 0x398   : > { %v1288_v24 = vpop.eup %1287 }
 0x399   : > { %908 = vadd.xlane.f32.xlu1 %v1288_v24 }
 0x40c   : > { %v909_v25 = vpop.xlane.xlu1 %908 }
 0x40d   : > { %1289 = vlog2.f32 %v909_v25 }
 0x413   : > { %v1290_v26 = vpop.eup %1289 }
 0x414   : > { %v911_v27 = vmul.f32 0.6931472, %v1290_v26 }
 0x416   : > { %v912_v28 = vsub.f32 %v905_v22, %v911_v27 }
 0x418   : > { %913 = vst [vmem:[%s436_s25] sm:$0xff] %v912_v28 }
 0x419 PF: > { %s1136_s27 = sshll.u32 %s1465_s16, 3  ;;  %s1882_s7 = sld [smem:[#allocation28_spill]] }
 0x41a   : > { %s927_s29 = sshll.u32 %s436_s25, 4  ;;  %s915_s8 = scalar_lea.sflag [#allocation9], %s434_s17  ;;  %s928_s29 = int_to_ptr.vmem [resolvable:$true] %s927_s29 }
 0x41f   : > { %s925_s26 = scalar_lea.hbm %s1882_s7, %s1136_s27  ;;  %s1371_s18 = scalar_lea.hbm %s1882_s7, 16 }
 0x420   : > { %s929_s9 = sshll.u32 %s925_s26, 4  ;;  %s930_s9 = int_to_ptr.hbm [resolvable:$true] %s929_s9 }
 0x421   : > { %s1365_s15 = sshra.s32 %s930_s9, 4  ;;  %s1366_s15 = int_to_ptr.hbm [resolvable:$true] %s1365_s15 }
 0x422   : > { %s1367_s21 = scalar_lea.hbm %s1366_s15, 8  ;;  %p1372_p1 = scmp.lt.s32.totalorder %s1366_s15, %s1882_s7 }
 0x423   : > { %p1368_p11 = scmp.ne.s32.totalorder %s1366_s15, %s1367_s21  ;;  %p1373_p4 = scmp.lt.s32.totalorder %s1371_s18, %s1367_s21 }
 0x425   : > { %p1369_p13 = pnand %p1368_p11, %p1618_p12  ;;  %p1374_p5 = por %p1373_p4, %p1372_p1 }
 0x427   : > { %p1370_p0 = pneg %p1369_p13 }
 0x429   : > { %p1375_p6 = pnand %p1374_p5, %p1370_p0 }
 0x42b   : > { %1378 = shalt.err (!%p1375_p6)
}
 0x42c   : > { %1156 = dma.vmem_to_hbm [thread:$0]  (%p1618_p12), %s928_s29, 128, %s930_s9, %s915_s8  }
 0x42d PF: > { %p1170_p8 = scmp.ge.s32.totalorder %s1477_s19, 2  ;;  %s941_s17 = sand.u32 1, %s1437_s30  }
 0x42e   : > { %s942_s22 = scalar_lea.sflag [#allocation9], %s941_s17 }
 0x42f   : > { %p1166_p3 = pnand %p1170_p8, %p1631_p2 }
 0x431   : > { %p1167_p9 = pneg %p1166_p3 }
 0x433   : > { %1432 = dma.done.wait (%p1167_p9), %s942_s22, 128  }
 0x434   : > { %1434 = vsyncadd (%p1167_p9), %s942_s22, 4294967168  ;;  %s28_s19 = sadd.s32 1, %s1477_s19   ;;  %s1883_s25 = sld [smem:[#allocation22_spill]] }
 0x435   : > { %p25_p7 = scmp.ge.s32.totalorder %s28_s19, 6   ;;  %s1884_s1 = sld [smem:[#allocation16_spill]] }
 0x436   : > { %s1885_s14 = sld [smem:[#allocation23_spill]]  ;;  %s1890_s30 = smov %s1441_s10 }
 0x437   : > { %s1886_s15 = sld [smem:[#allocation17_spill]]  ;;  %s1891_s10 = smov %s1445_s11 }
 0x438   : > { %s1887_s16 = sld [smem:[#allocation18_spill]]  ;;  %s1893_s12 = smov %s1453_s13 }
 0x439   : > { %s1888_s17 = sld [smem:[#allocation19_spill]]  ;;  %27 = sbr.rel (!%p25_p7) target bundleno = 17 (0x11), region = 125 }
 0x43a   : > { %s1889_s18 = sld [smem:[#allocation20_spill]]  ;;  %s1892_s11 = smov %s1883_s25 }
 0x43b   : > { %s1894_s13 = smov %s1884_s1 }
 0x43e   :  { %948 = vsyncpa [#allocation8], 1 }
 0x43f   :  { %950 = vsyncpa [#allocation8 + $0x1], 1 }
 0x440   :  { %951 = vsyncpa [#allocation11], 1 }
 0x441   :  { %953 = vsyncpa [#allocation11 + $0x1], 1 }
 0x442   :  { %954 = vsyncpa [#allocation9], 1 }
 0x443   :  { %956 = vsyncpa [#allocation9 + $0x1], 1 }

</bundles_post_ra>
